<compile_context>
chip_gen: v5e
topology: v5e:2x2
jax: 0.10.0
libtpu: 0.0.40
codegen_flags: <defaults>
</compile_context>

<pallas_src>
import jax
import jax.numpy as jnp
from jax.experimental import pallas as pl
from jax.experimental.pallas import tpu as pltpu

EPS = 1e-5


def _up_kernel(x_ref, scale_ref, shift_ref, w_ref, b_ref, o_ref):
    # x_ref:     (1, Cin, T)    channel-major spatial tile (NCHW slab), f32
    # scale_ref: (Cin, 1)       fused BN scale  = gamma / sqrt(var + eps)
    # shift_ref: (Cin, 1)       fused BN shift  = beta - mean * scale
    # w_ref:     (4*Cout, Cin)  conv-transpose weight, rows = (kh, kw, cout), bf16
    # b_ref:     (4*Cout, 1)    bias tiled over the 4 kernel positions, f32
    # o_ref:     (1, 4*Cout, T) f32
    x = x_ref[0].astype(jnp.float32)                              # (Cin, T)
    xn = x * scale_ref[...] + shift_ref[...]                      # BatchNorm (affine, fused)
    xn = jnp.maximum(xn, 0.0).astype(jnp.bfloat16)                # ReLU, bf16 for the MXU
    y = jnp.dot(w_ref[...], xn, preferred_element_type=jnp.float32)  # (4*Cout, T), f32 acc
    o_ref[0] = (y + b_ref[...]).astype(o_ref.dtype)


def _vmem_limit_and_budget():
    """Returns (vmem_limit_bytes for the compiler, tile budget in bytes).

    Conservative default assumes v7x's 64 MiB/TensorCore VMEM; if the runtime
    exposes the real capacity (128 MiB on v5e/v6e) the limit scales up.
    """
    cap = 64 * 1024 * 1024
    try:  # optional trace-time hardware query
        cap = int(pltpu.get_tpu_info().vmem_capacity_bytes)
    except Exception:
        pass
    limit = min(int(cap * 0.75), 96 * 1024 * 1024)   # raise the scoped-VMEM ceiling
    budget = int(limit * 0.75)                       # headroom for compiler scratch
    return limit, budget


def _pick_col_tile(hw, cin, cout, budget_bytes):
    """Largest spatial (lane) tile that fits the VMEM budget and divides H*W."""
    # Double-buffered f32 input + f32 output per lane column, plus the
    # (grid-invariant, assumed double-buffered) bf16 weight and f32 vectors.
    const_bytes = 2 * (4 * cout * cin * 2 + (2 * cin + 4 * cout) * 4)
    per_col = 2 * (cin * 4) + 2 * (4 * cout * 4)
    cap = max(128, (budget_bytes - const_bytes) // per_col)
    if hw <= cap:
        return hw                        # whole spatial extent in one tile
    t = (min(cap, hw) // 128) * 128      # lane-dense: multiple of 128
    while t >= 128:
        if hw % t == 0:
            return t
        t -= 128
    # TODO(synk): pad/mask a ragged spatial tail instead of falling back to full HW.
    return hw


@jax.jit
def up_forward(x_nchw, gamma, beta, weight, bias):
    """Forward pass of `Up` (training-mode BatchNorm: batch statistics).

    x_nchw: (N, Cin, H, W) float32
    gamma, beta: (Cin,)                  BatchNorm2d affine params
    weight: (Cin, Cout, 2, 2)            ConvTranspose2d weight (PyTorch layout)
    bias:   (Cout,)                      ConvTranspose2d bias
    returns: (N, Cout, 2H, 2W) float32
    """
    N, Cin, H, W = x_nchw.shape
    Cout = weight.shape[1]
    HW = H * W

    # ---- BN batch stats: single fused sum / sum-of-squares pass over x ----
    x_f32 = x_nchw.astype(jnp.float32)
    cnt = N * HW
    s1 = jnp.sum(x_f32, axis=(0, 2, 3))
    s2 = jnp.sum(x_f32 * x_f32, axis=(0, 2, 3))
    mean = s1 / cnt
    var = jnp.maximum(s2 / cnt - mean * mean, 0.0)    # biased var, matches PyTorch BN
    scale = gamma / jnp.sqrt(var + EPS)
    shift = beta - mean * scale

    # ---- channel-major view: free reshape of NCHW, no transpose ----
    x3 = x_f32.reshape(N, Cin, HW)

    # weight (Cin, Cout, kh, kw) -> (kh, kw, Cout, Cin) -> (4*Cout, Cin), bf16
    w_t = jnp.transpose(weight, (2, 3, 1, 0)).reshape(4 * Cout, Cin).astype(jnp.bfloat16)
    b_t = jnp.tile(bias, 4).reshape(4 * Cout, 1).astype(jnp.float32)
    scale2 = scale.reshape(Cin, 1).astype(jnp.float32)
    shift2 = shift.reshape(Cin, 1).astype(jnp.float32)

    vmem_limit, vmem_budget = _vmem_limit_and_budget()
    col_tile = _pick_col_tile(HW, Cin, Cout, vmem_budget)
    grid = (N, HW // col_tile)   # N >= 2 in practice -> both v7x TCs get work

    out_flat = pl.pallas_call(
        _up_kernel,
        out_shape=jax.ShapeDtypeStruct((N, 4 * Cout, HW), jnp.float32),
        grid_spec=pltpu.PrefetchScalarGridSpec(
            num_scalar_prefetch=0,
            grid=grid,
            in_specs=[
                pl.BlockSpec((1, Cin, col_tile), lambda n, j: (n, 0, j)),
                pl.BlockSpec((Cin, 1), lambda n, j: (0, 0)),
                pl.BlockSpec((Cin, 1), lambda n, j: (0, 0)),
                # NOTE: weight / scale / shift / bias are grid-invariant (DMA'd
                # once); their VMEM footprint is charged to the budget in
                # _pick_col_tile instead of relying on pl.Buffered(1).
                pl.BlockSpec((4 * Cout, Cin), lambda n, j: (0, 0)),
                pl.BlockSpec((4 * Cout, 1), lambda n, j: (0, 0)),
            ],
            out_specs=pl.BlockSpec((1, 4 * Cout, col_tile), lambda n, j: (n, 0, j)),
        ),
        compiler_params=pltpu.CompilerParams(
            dimension_semantics=("parallel", "parallel"),
            vmem_limit_bytes=vmem_limit,
        ),
    )(x3, scale2, shift2, w_t, b_t)

    # ---- 2x2 de-interleave back to NCHW (only remaining XLA layout pass) ----
    # out_flat[n, (kh*2+kw)*Cout + co, h*W + w]  ->  y[n, co, 2h+kh, 2w+kw]
    y = out_flat.reshape(N, 2, 2, Cout, H, W)
    y = jnp.transpose(y, (0, 3, 4, 1, 5, 2)).reshape(N, Cout, 2 * H, 2 * W)
    return y


def up_reference(x_nchw, gamma, beta, weight, bias):
    """Pure-JAX reference matching PyTorch semantics (training-mode BN)."""
    mean = jnp.mean(x_nchw, axis=(0, 2, 3), keepdims=True)
    var = jnp.var(x_nchw, axis=(0, 2, 3), keepdims=True)
    z = (x_nchw - mean) / jnp.sqrt(var + EPS)
    z = z * gamma.reshape(1, -1, 1, 1) + beta.reshape(1, -1, 1, 1)
    z = jnp.maximum(z, 0.0)
    N, Cin, H, W = x_nchw.shape
    Cout = weight.shape[1]
    t = jnp.einsum('nchw,coij->nohiwj', z, weight)     # (N,Cout,H,2,W,2)
    y = t.reshape(N, Cout, 2 * H, 2 * W) + bias.reshape(1, -1, 1, 1)
    return y


if __name__ == "__main__":
    key = jax.random.PRNGKey(0)
    k_x, k_w, k_b = jax.random.split(key, 3)

    N, Cin, Cout, H, W = 2, 4, 8, 16, 16
    x = jax.random.normal(k_x, (N, Cin, H, W), dtype=jnp.float32)

    # Deterministic synthetic parameters (not a checkpoint):
    gamma = jnp.ones((Cin,), dtype=jnp.float32)        # BatchNorm2d default init
    beta = jnp.zeros((Cin,), dtype=jnp.float32)
    fan = Cin * 2 * 2
    bound = 1.0 / jnp.sqrt(fan)
    weight = jax.random.uniform(k_w, (Cin, Cout, 2, 2), jnp.float32, -bound, bound)
    bias = jax.random.uniform(k_b, (Cout,), jnp.float32, -bound, bound)

    y = up_forward(x, gamma, beta, weight, bias)
    y = jax.block_until_ready(y)

    y_ref = up_reference(x, gamma, beta, weight, bias)
    assert y.shape == (N, Cout, 2 * H, 2 * W), y.shape
    # Tolerance loosened for bf16 MXU inputs (f32 accumulation keeps it bounded).
    err = float(jnp.max(jnp.abs(y - y_ref)))
    assert jnp.allclose(y, y_ref, atol=3e-2, rtol=3e-2), err

    print("KERNEL_OK")
</pallas_src>

<mosaic_0001>
module attributes {stable_mosaic.version = 11 : i64} {
  func.func @_up_kernel(%arg0: i32, %arg1: i32, %arg2: memref<1x4x256xf32, #tpu.memory_space<vmem>>, %arg3: memref<4x1xf32, #tpu.memory_space<vmem>>, %arg4: memref<4x1xf32, #tpu.memory_space<vmem>>, %arg5: memref<32x4xbf16, #tpu.memory_space<vmem>>, %arg6: memref<32x1xf32, #tpu.memory_space<vmem>>, %arg7: memref<1x32x256xf32, #tpu.memory_space<vmem>>) attributes {dimension_semantics = [#tpu.dimension_semantics<parallel>, #tpu.dimension_semantics<parallel>], iteration_bounds = array<i64: 2, 1>, scalar_prefetch = 0 : i64, scratch_operands = 0 : i64, tpu.core_type = #tpu.core_type<tc>, window_params = [{transform_indices = @transform_0, window_bounds = array<i64: 1, 4, 256>}, {pipeline_mode = #tpu.pipeline_mode<synchronous>, transform_indices = @transform_1, window_bounds = array<i64: 4, 1>}, {pipeline_mode = #tpu.pipeline_mode<synchronous>, transform_indices = @transform_2, window_bounds = array<i64: 4, 1>}, {pipeline_mode = #tpu.pipeline_mode<synchronous>, transform_indices = @transform_3, window_bounds = array<i64: 32, 4>}, {pipeline_mode = #tpu.pipeline_mode<synchronous>, transform_indices = @transform_4, window_bounds = array<i64: 32, 1>}, {transform_indices = @transform_5, window_bounds = array<i64: 1, 32, 256>}]} {
    %c0 = arith.constant 0 : index
    %c0_0 = arith.constant 0 : index
    %c0_1 = arith.constant 0 : index
    %0 = vector.load %arg2[%c0, %c0_0, %c0_1] : memref<1x4x256xf32, #tpu.memory_space<vmem>>, vector<1x4x256xf32>
    %1 = vector.shape_cast %0 : vector<1x4x256xf32> to vector<4x256xf32>
    %c0_2 = arith.constant 0 : index
    %c0_3 = arith.constant 0 : index
    %2 = vector.load %arg3[%c0_2, %c0_3] : memref<4x1xf32, #tpu.memory_space<vmem>>, vector<4x1xf32>
    %3 = vector.broadcast %2 : vector<4x1xf32> to vector<4x256xf32>
    %4 = arith.mulf %1, %3 : vector<4x256xf32>
    %c0_4 = arith.constant 0 : index
    %c0_5 = arith.constant 0 : index
    %5 = vector.load %arg4[%c0_4, %c0_5] : memref<4x1xf32, #tpu.memory_space<vmem>>, vector<4x1xf32>
    %6 = vector.broadcast %5 : vector<4x1xf32> to vector<4x256xf32>
    %7 = arith.addf %4, %6 : vector<4x256xf32>
    %cst = arith.constant 0.000000e+00 : f32
    %8 = vector.broadcast %cst : f32 to vector<4x256xf32>
    %9 = arith.maximumf %7, %8 : vector<4x256xf32>
    %10 = arith.truncf %9 : vector<4x256xf32> to vector<4x256xbf16>
    %c0_6 = arith.constant 0 : index
    %c0_7 = arith.constant 0 : index
    %11 = vector.load %arg5[%c0_6, %c0_7] : memref<32x4xbf16, #tpu.memory_space<vmem>>, vector<32x4xbf16>
    %cst_8 = arith.constant dense<0.000000e+00> : vector<32x256xf32>
    %12 = tpu.matmul %11, %10, %cst_8 {dimension_numbers = #tpu.dot_dimension_numbers<[1], [0], [0], [1], [0, 0, 1, 1], [], []>} : vector<32x4xbf16>, vector<4x256xbf16>, vector<32x256xf32> -> vector<32x256xf32>
    %c0_9 = arith.constant 0 : index
    %c0_10 = arith.constant 0 : index
    %13 = vector.load %arg6[%c0_9, %c0_10] : memref<32x1xf32, #tpu.memory_space<vmem>>, vector<32x1xf32>
    %14 = vector.broadcast %13 : vector<32x1xf32> to vector<32x256xf32>
    %15 = arith.addf %12, %14 : vector<32x256xf32>
    %c0_11 = arith.constant 0 : index
    %c0_12 = arith.constant 0 : index
    %c0_13 = arith.constant 0 : index
    %16 = vector.load %arg7[%c0_11, %c0_12, %c0_13] : memref<1x32x256xf32, #tpu.memory_space<vmem>>, vector<1x32x256xf32>
    %17 = vector.shape_cast %16 : vector<1x32x256xf32> to vector<32x256xf32>
    %18 = vector.shape_cast %15 : vector<32x256xf32> to vector<1x32x256xf32>
    tpu.vector_store %arg7[%c0_11, %c0_12, %c0_13], %18 {strides = array<i32>} : memref<1x32x256xf32, #tpu.memory_space<vmem>>, vector<1x32x256xf32>,
    return
  }
  func.func @transform_0(%arg0: i32, %arg1: i32) -> (i32, i32, i32) {
    %c0_i32 = arith.constant 0 : i32
    %c0_i32_0 = arith.constant 0 : i32
    return %arg0, %c0_i32, %arg1 : i32, i32, i32
  }
  func.func @transform_1(%arg0: i32, %arg1: i32) -> (i32, i32) {
    %c0_i32 = arith.constant 0 : i32
    %c0_i32_0 = arith.constant 0 : i32
    %c0_i32_1 = arith.constant 0 : i32
    return %c0_i32, %c0_i32_0 : i32, i32
  }
  func.func @transform_2(%arg0: i32, %arg1: i32) -> (i32, i32) {
    %c0_i32 = arith.constant 0 : i32
    %c0_i32_0 = arith.constant 0 : i32
    %c0_i32_1 = arith.constant 0 : i32
    return %c0_i32, %c0_i32_0 : i32, i32
  }
  func.func @transform_3(%arg0: i32, %arg1: i32) -> (i32, i32) {
    %c0_i32 = arith.constant 0 : i32
    %c0_i32_0 = arith.constant 0 : i32
    %c0_i32_1 = arith.constant 0 : i32
    return %c0_i32, %c0_i32_0 : i32, i32
  }
  func.func @transform_4(%arg0: i32, %arg1: i32) -> (i32, i32) {
    %c0_i32 = arith.constant 0 : i32
    %c0_i32_0 = arith.constant 0 : i32
    %c0_i32_1 = arith.constant 0 : i32
    return %c0_i32, %c0_i32_0 : i32, i32
  }
  func.func @transform_5(%arg0: i32, %arg1: i32) -> (i32, i32, i32) {
    %c0_i32 = arith.constant 0 : i32
    %c0_i32_0 = arith.constant 0 : i32
    return %arg0, %c0_i32, %arg1 : i32, i32, i32
  }
}

</mosaic_0001>

<bundles_post_ra>
// kernel: tile.8
= control target key start
LH: loop header
LB: loop body
LE: loop exit
PB: predicated region body
PF: predicated region fallthrough
CT: control target
= control target key end

     0   :  { %s22_s0 = inlined_call_operand.vmem [shape: f32[8], index: 0, kind: input, shape index: {}]   ;;  %s23_s1 = inlined_call_operand.vmem [shape: f32[4,8], index: 1, kind: output, shape index: {}]  }
   0x1   :  { %v4_v0 = vld [vmem:[%s22_s0] ss:$0 sm:$0xff] }
   0x2   :  { %5 = vst [vmem:[%s23_s1] sm:$0xf] %v4_v0 }

// kernel: tile.0
= control target key start
LH: loop header
LB: loop body
LE: loop exit
PB: predicated region body
PF: predicated region fallthrough
CT: control target
= control target key end

     0   :  { %s66_s8 = smov 125   ;;  %s67_s9 = smov 123   ;;  %vm7_vm0 = vcmask 7168   ;;  %s117_s0 = inlined_call_operand.vmem [shape: f32[4,8], index: 0, kind: input, shape index: {}]   ;;  %s118_s1 = inlined_call_operand.vmem [shape: f32[32,1], index: 1, kind: output, shape index: {}]  }
   0x1   :  { %v4_v0 = vld [vmem:[%s117_s0] sm:$0xf]  ;;  %s65_s0 = smov 127   ;;  %s68_s10 = smov 126  }
   0x2   :  { %5 = vst [vmem:[#allocation0] sm:$0xf] %v4_v0  ;;  %s69_s11 = smov 124   ;;  %s70_s12 = smov 122  }
   0x3   :  { %s71_s13 = smov 121  }
   0x9   :  { %v9_v1 = vld [vmem:[#allocation0] sm:$0xf]  }
   0xa   :  { %v21_v2 = vld [vmem:[#allocation0] sm:$0xf]   ;;  %10 = vrot.lane.b32.xlu0 %v9_v1, %s65_s0 }
   0xb   :  { %22 = vrot.lane.b32.xlu1 %v21_v2, %s66_s8  ;;  %v33_v3 = vld [vmem:[#allocation0] sm:$0xf]  }
   0xc   :  { %34 = vrot.lane.b32.xlu2 %v33_v3, %s67_s9  ;;  %v15_v4 = vld [vmem:[#allocation0] sm:$0xf]  }
   0xd   :  { %v27_v5 = vld [vmem:[#allocation0] sm:$0xf]  }
   0xe   :  { %v39_v6 = vld [vmem:[#allocation0] sm:$0xf]  }
   0xf   :  { %v45_v7 = vld [vmem:[#allocation0] sm:$0xf]  }
  0x10   :  { %v6_v8 = vld [vmem:[#allocation0] sm:$0xf]  }
  0x11   :  { %8 = vst.msk [vmem:[%s118_s1] ss:$8 sm:$0xf] %vm7_vm0, %v6_v8  }
  0x12   :  { %16 = vrot.lane.b32.xlu0 %v15_v4, %s68_s10 }
  0x13   :  { %28 = vrot.lane.b32.xlu1 %v27_v5, %s69_s11 }
  0x14   :  { %40 = vrot.lane.b32.xlu2 %v39_v6, %s70_s12 }
  0x1a   :  { %46 = vrot.lane.b32.xlu0 %v45_v7, %s71_s13 }
  0x66   :  { %v35_v9 = vpop.permute.xlu2 %34  }
  0x67   :  { %55 = vst.msk [vmem:[%s118_s1 + $0x5] ss:$8 sm:$0xf] %vm7_vm0, %v35_v9  }
  0x6e   :  { %v41_v10 = vpop.permute.xlu2 %40  }
  0x6f   :  { %56 = vst.msk [vmem:[%s118_s1 + $0x6] ss:$8 sm:$0xf] %vm7_vm0, %v41_v10  }
  0x7c   :  { %v11_v11 = vpop.permute.xlu0 %10  }
  0x7d   :  { %v23_v12 = vpop.permute.xlu1 %22   ;;  %51 = vst.msk [vmem:[%s118_s1 + $0x1] ss:$8 sm:$0xf] %vm7_vm0, %v11_v11  }
  0x7e   :  { %53 = vst.msk [vmem:[%s118_s1 + $0x3] ss:$8 sm:$0xf] %vm7_vm0, %v23_v12  }
  0x84   :  { %v17_v13 = vpop.permute.xlu0 %16  }
  0x85   :  { %v29_v14 = vpop.permute.xlu1 %28   ;;  %52 = vst.msk [vmem:[%s118_s1 + $0x2] ss:$8 sm:$0xf] %vm7_vm0, %v17_v13  }
  0x86   :  { %54 = vst.msk [vmem:[%s118_s1 + $0x4] ss:$8 sm:$0xf] %vm7_vm0, %v29_v14  }
  0x8c   :  { %v47_v15 = vpop.permute.xlu0 %46  }
  0x8d   :  { %57 = vst.msk [vmem:[%s118_s1 + $0x7] ss:$8 sm:$0xf] %vm7_vm0, %v47_v15  }

// kernel: up_forward.1
= control target key start
LH: loop header
LB: loop body
LE: loop exit
PB: predicated region body
PF: predicated region fallthrough
CT: control target
= control target key end

     0   :  { %s596_s18 = smov 0   ;;  %s598_s19 = smov 0   ;;  %s657_s0 = inlined_call_operand.vmem [shape: f32[2,4,256], index: 0, kind: input, shape index: {}]   ;;  %s658_s1 = inlined_call_operand.vmem [shape: f32[4,1], index: 1, kind: input, shape index: {}]   ;;  %s659_s2 = inlined_call_operand.vmem [shape: f32[4,1], index: 2, kind: input, shape index: {}]   ;;  %s660_s3 = inlined_call_operand.vmem [shape: bf16[32,4], index: 3, kind: input, shape index: {}]   ;;  %s661_s4 = inlined_call_operand.vmem [shape: f32[32,1], index: 4, kind: input, shape index: {}]   ;;  %s662_s5 = inlined_call_operand.vmem [shape: f32[2,32,256], index: 5, kind: output, shape index: {}]  }
   0x1   :  { %s600_s20 = smov 0  }
   0x2 LB: > { %s27_s21 = sadd.s32 1, %s558_s19  ;;  %p486_p0 = scmp.ge.s32.totalorder %s562_s20, 1  ;;  %s562_s20 = sphi %s600_s20, %s15_s20   ;;  %s558_s19 = sphi %s598_s19, %s664_s19   ;;  %s554_s18 = sphi %s596_s18, %s663_s18  }
   0x3   : > { %p29_p1 = scmp.ge.s32.totalorder %s27_s21, 2  ;;  %p208_p2 = scmp.lt.s32.totalorder %s562_s20, 3 }
   0x5   : > { %s666_s21 = smov (%p29_p1, %s27_s21), 0  ;;  %p209_p3 = pnand %p486_p0, %p208_p2 }
   0x6   : > { %p245_p4 = scmp.lt.s32.totalorder (!%p209_p3), %s554_s18, 1 }
   0x7   : > { %212 = sbr.rel (%p209_p3) target bundleno = 301 (0x12d), region = 40 }
   0xc   : > { %v266_v0 = vld [vmem:[%s658_s1] sm:$0xf]  ;;  %v564_v1 = vmov 0   ;;  %s668_s18 = smov (!%p245_p4, %s554_s18), 1  ;;  %v565_v3 = vmov 839922192  }
   0xd   : > { %537 = vset.pattern.permute.xlu0 %v564_v1  ;;  %538 = vset.pattern.permute.xlu1 %v564_v1  ;;  %v277_v2 = vld [vmem:[%s659_s2] sm:$0xf]  ;;  %v272_v4 = vunpack.c.l.s4 %v565_v3  ;;  %v303_v6 = vld [vmem:[%s661_s4 + $0x10] sm:$0xff]  ;;  %s505_s30 = sshll.u32 %s668_s18, 3  ;;  %v302_v9 = vld [vmem:[%s661_s4 + $0x8] sm:$0xff]  ;;  %vm342_vm0 = vcmask 1041408  }
   0xe   : > { %269 = vperm.xlu0 %537, %v266_v0   ;;  %539 = vset.pattern.permute.xlu2 %v564_v1  ;;  %v301_v5 = vld [vmem:[%s661_s4] sm:$0xff]  ;;  %s252_s8 = scalar_lea.vmem %s657_s0, %s505_s30  ;;  %v304_v10 = vld [vmem:[%s661_s4 + $0x18] sm:$0xff]  ;;  %v508_v25 = vld [vmem:[%s660_s3 + $0x8] sm:$0xff]  ;;  %vm335_vm1 = vcmask 31744   ;;  %s506_s17 = sshll.u32 %s668_s18, 6 }
   0xf   : > { %307 = vperm.xlu1 %538, %v301_v5   ;;  %317 = vperm.xlu2 %539, %v303_v6   ;;  %v273_v8 = vunpack.c.0.s8 %v272_v4  ;;  %v265_v12 = vld [vmem:[%s252_s8] sm:$0xff]  ;;  %s262_s24 = scalar_lea.vmem %s662_s5, %s506_s17 }
  0x10   : > { %v507_v24 = vld [vmem:[%s660_s3] sm:$0xff] }
  0x16   : > { %280 = vperm.xlu0 %537, %v277_v2  }
  0x17   : > { %312 = vperm.xlu1 %538, %v302_v9   ;;  %322 = vperm.xlu2 %539, %v304_v10  }
  0x69   : > { %v318_v31 = vpop.permute.xlu2 %317 }
  0x71   : > { %v323_v41 = vpop.permute.xlu2 %322 }
  0x80   : > { %v270_v7 = vpop.permute.xlu0 %269 }
  0x81   : > { %v274_v11 = vperm.slane %v270_v7, %v273_v8  ;;  %v308_v26 = vpop.permute.xlu1 %307 }
  0x83   : > { %v276_v14 = vmul.f32 %v274_v11, %v265_v12 }
  0x88   : > { %v281_v13 = vpop.permute.xlu0 %280 }
  0x89   : > { %v285_v15 = vperm.slane %v281_v13, %v273_v8  ;;  %v313_v35 = vpop.permute.xlu1 %312 }
  0x8b   : > { %v287_v16 = vadd.f32 %v285_v15, %v276_v14 }
  0x8d   : > { %v288_v17 = vmax.f32 %v287_v16, 0.0 }
  0x8f   : > { %290 = vst [vmem:[#allocation1] ss:$2 sm:$0xff] %v288_v17 }
  0x96   : > { %v291_v18 = vld.sshfl [vmem:[#allocation1] sm:$0xff pattern:$0x75316420]  ;;  %v292_v19 = vld.sshfl [vmem:[#allocation1 + $0x8] sm:$0xff pattern:$0x75316420] }
  0x97   : > { %v295_v20 = vpack.c.bf16 %v291_v18, %v291_v18  ;;  %v296_v21 = vpack.c.bf16 %v292_v19, %v292_v19 }
  0x99   : > { %v344_v22 = vsel %vm342_vm0, %v295_v20, 0  ;;  %v347_v23 = vsel %vm342_vm0, %v296_v21, 0 }
  0x9a   : > { %356 = vmatpush.bf16.msra.mxu0 %v344_v22  ;;  %509 = vmatpush.bf16.msra.mxu2 %v344_v22 }
  0x9b   : > { %375 = vmatpush.bf16.msra.mxu1 %v347_v23  ;;  %510 = vmatpush.bf16.msra.mxu3 %v347_v23 }
  0x9d   : > { %499 = vmatmul.msk.bf16.vlgmr.msra.gmra.mxu0 %vm335_vm1, %v507_v24  ;;  %500 = vmatmul.msk.bf16.vlgmr.msra.gmra.mxu2 %vm335_vm1, %v508_v25 }
  0x9e   : > { %501 = vmatmul.msk.bf16.vlgmr.msra.gmra.mxu1 %vm335_vm1, %v507_v24  ;;  %502 = vmatmul.msk.bf16.vlgmr.msra.gmra.mxu3 %vm335_vm1, %v508_v25 }
 0x11a   : > { %v358_v27 = vpop.f32.mrf.mxu0 }
 0x11b   : > { %v359_v28 = vadd.f32 %v358_v27, %v308_v26  ;;  %v377_v29 = vpop.f32.mrf.mxu1 }
 0x11c   : > { %v378_v30 = vadd.f32 %v377_v29, %v308_v26 }
 0x11d   : > { %387 = vst [vmem:[%s262_s24] sm:$0xff] %v359_v28 }
 0x11e   : > { %388 = vst [vmem:[%s262_s24 + $0x8] sm:$0xff] %v378_v30 }
 0x120   : > { %v363_v32 = vpop.f32.mrf.mxu2 }
 0x121   : > { %v364_v33 = vadd.f32 %v363_v32, %v318_v31  ;;  %v382_v34 = vpop.f32.mrf.mxu3 }
 0x122   : > { %v383_v36 = vadd.f32 %v382_v34, %v318_v31  ;;  %v360_v37 = vpop.f32.mrf.mxu0 }
 0x123   : > { %391 = vst [vmem:[%s262_s24 + $0x20] sm:$0xff] %v364_v33  ;;  %v361_v38 = vadd.f32 %v360_v37, %v313_v35  ;;  %v379_v39 = vpop.f32.mrf.mxu1 }
 0x124   : > { %392 = vst [vmem:[%s262_s24 + $0x28] sm:$0xff] %v383_v36  ;;  %v380_v40 = vadd.f32 %v379_v39, %v313_v35 }
 0x125   : > { %389 = vst [vmem:[%s262_s24 + $0x10] sm:$0xff] %v361_v38 }
 0x126   : > { %390 = vst [vmem:[%s262_s24 + $0x18] sm:$0xff] %v380_v40 }
 0x128   : > { %v365_v42 = vpop.f32.mrf.mxu2 }
 0x129   : > { %v366_v43 = vadd.f32 %v365_v42, %v323_v41  ;;  %v384_v44 = vpop.f32.mrf.mxu3 }
 0x12a   : > { %v385_v45 = vadd.f32 %v384_v44, %v323_v41 }
 0x12b   : > { %393 = vst [vmem:[%s262_s24 + $0x30] sm:$0xff] %v366_v43 }
 0x12c   : > { %394 = vst [vmem:[%s262_s24 + $0x38] sm:$0xff] %v385_v45 }
 0x12d PF: > { %s15_s20 = sadd.s32 1, %s562_s20   ;;  %s663_s18 = smov %s558_s19 }
 0x12e   : > { %p12_p5 = scmp.ge.s32.totalorder %s15_s20, 4   ;;  %s664_s19 = smov %s666_s21 }
 0x130   :  { %14 = sbr.rel (!%p12_p5) target bundleno = 2 (0x2), region = 70 }

</bundles_post_ra>
